<compile_context>
chip_gen: v7x
topology: tpu7x:2x2x1
jax: 0.10.0
libtpu: 0.0.40
codegen_flags: <defaults>
</compile_context>

<pallas_src>
import jax
import jax.numpy as jnp
import numpy as np
from jax.experimental import pallas as pl
from jax.experimental.pallas import tpu as pltpu

IN_DIM = 4      # CartPole observation size
HID = 64
OUT_DIM = 2     # number of actions
K_PAD = 8       # fc1 input rows: 4 obs + 1 ones row (bias) + 3 zero rows
OUT_PAD = 8     # fc3 output rows padded 2 -> 8 sublanes (output is transposed)
MAX_TILE = 4096  # rows per grid step; ~2.6 MiB VMEM at this tile, far under limit


def _round_up(n, m):
    return ((n + m - 1) // m) * m


def _num_tensorcores():
    # v7x has 2 TensorCores per chip; v5e/v6e have 1. Detect defensively.
    try:
        kind = jax.devices()[0].device_kind.lower()
    except Exception:
        return 1
    return 2 if "v7" in kind else 1


NUM_TC = _num_tensorcores()


def _choose_tiling(B):
    """Pick (tile, grid, Bp) minimizing grid steps and padded rows."""
    if NUM_TC > 1 and B >= 256:
        # Use both TensorCores for replay-size batches on v7x.
        nsteps = max(NUM_TC, pl.cdiv(B, MAX_TILE))
    else:
        nsteps = pl.cdiv(B, MAX_TILE)
    if nsteps <= 1:
        tile = _round_up(B, 8)          # grid == 1: block == full array dims
    else:
        # grid > 1: the lane (batch) block dim must be a multiple of 128.
        tile = _round_up(pl.cdiv(B, nsteps), 128)
    grid = pl.cdiv(B, tile)
    return tile, grid, tile * grid


def qnet_kernel(xT_ref, w1_ref, w2_ref, b2_ref, w3_ref, b3_ref, o_ref):
    # Batch lives along lanes everywhere; weights are in torch (out, in) layout.
    xT = xT_ref[...]                                               # (8, tile), row 4 == 1.0
    h1 = jnp.dot(w1_ref[...], xT, preferred_element_type=jnp.float32)
    h1 = jnp.maximum(h1, 0.0)                                      # (64, tile); fc1 bias via ones row
    h2 = jnp.dot(w2_ref[...], h1, preferred_element_type=jnp.float32)
    h2 = jnp.maximum(h2 + b2_ref[...], 0.0)                        # (64, tile) + (64, 1)
    q = jnp.dot(w3_ref[...], h2, preferred_element_type=jnp.float32)
    o_ref[...] = q + b3_ref[...]                                   # (8, tile) + (8, 1)


@jax.jit
def qnet_forward(x, params):
    """x: (B, 4); params: packed (w1e, w2, b2, w3p, b3p). Returns (B, 2) Q-values."""
    w1e, w2, b2c, w3p, b3c = params
    B = x.shape[0]
    tile, grid, Bp = _choose_tiling(B)

    # Transposed, padded input: rows 0..3 = obs, row 4 = 1.0 (bias), rows 5..7 = 0.
    xT = jnp.concatenate(
        [x.astype(jnp.float32).T,
         jnp.ones((1, B), jnp.float32),
         jnp.zeros((K_PAD - IN_DIM - 1, B), jnp.float32)], axis=0)
    if Bp != B:
        xT = jnp.pad(xT, ((0, 0), (0, Bp - B)))

    qT = pl.pallas_call(
        qnet_kernel,
        out_shape=jax.ShapeDtypeStruct((OUT_PAD, Bp), jnp.float32),
        grid=(grid,),
        in_specs=[
            pl.BlockSpec((K_PAD, tile), lambda i: (0, i)),     # x^T batch block
            pl.BlockSpec((HID, K_PAD), lambda i: (0, 0)),      # fc1 W|b (resident)
            pl.BlockSpec((HID, HID), lambda i: (0, 0)),        # fc2 W (resident)
            pl.BlockSpec((HID, 1), lambda i: (0, 0)),          # fc2 b
            pl.BlockSpec((OUT_PAD, HID), lambda i: (0, 0)),    # fc3 W (padded rows)
            pl.BlockSpec((OUT_PAD, 1), lambda i: (0, 0)),      # fc3 b (padded rows)
        ],
        out_specs=pl.BlockSpec((OUT_PAD, tile), lambda i: (0, i)),
        compiler_params=pltpu.CompilerParams(
            dimension_semantics=("parallel",)),
    )(xT, w1e, w2, b2c, w3p, b3c)

    # Un-pad: rows 0..1 are the real Q-values, columns 0..B-1 the real batch.
    return qT[:OUT_DIM, :B].T


def init_params(key):
    """Init matching torch.nn.Linear defaults (uniform +-1/sqrt(fan_in)),
    packed in the layouts the kernel expects (torch (out, in) orientation)."""
    keys = jax.random.split(key, 6)

    def uni(k, shape, bound):
        return jax.random.uniform(k, shape, jnp.float32,
                                  minval=-bound, maxval=bound)

    bnd1 = 1.0 / np.sqrt(IN_DIM)
    bnd2 = 1.0 / np.sqrt(HID)
    fc1_w = uni(keys[0], (HID, IN_DIM), bnd1)   # torch layout (out, in)
    fc1_b = uni(keys[1], (HID,), bnd1)
    fc2_w = uni(keys[2], (HID, HID), bnd2)
    fc2_b = uni(keys[3], (HID,), bnd2)
    fc3_w = uni(keys[4], (OUT_DIM, HID), bnd2)
    fc3_b = uni(keys[5], (OUT_DIM,), bnd2)

    # fc1: cols 0..3 = W, col 4 = b (picked up by the ones row), cols 5..7 = 0.
    w1e = (jnp.zeros((HID, K_PAD), jnp.float32)
           .at[:, :IN_DIM].set(fc1_w)
           .at[:, IN_DIM].set(fc1_b))
    b2c = fc2_b[:, None]                                       # (64, 1)
    w3p = jnp.zeros((OUT_PAD, HID), jnp.float32).at[:OUT_DIM, :].set(fc3_w)
    b3c = jnp.zeros((OUT_PAD, 1), jnp.float32).at[:OUT_DIM, 0].set(fc3_b)
    return (w1e, fc2_w, b2c, w3p, b3c)


def qnet_reference(x, params):
    """Pure-JAX reference using the un-padded slices of the packed params."""
    w1e, w2, b2c, w3p, b3c = params
    h1 = jnp.maximum(x @ w1e[:, :IN_DIM].T + w1e[:, IN_DIM], 0.0)
    h2 = jnp.maximum(h1 @ w2.T + b2c[:, 0], 0.0)
    return h2 @ w3p[:OUT_DIM, :].T + b3c[:OUT_DIM, 0]


# TODO(synk): epsilon-greedy sample_action (argmax + host RNG coin flip) is an
# RL-loop utility, not part of the module forward; a fused in-kernel argmax
# (which would eliminate the Q-value output entirely for acting) could be
# added with pltpu.prng_seed/prng_random_bits if needed.


if __name__ == "__main__":
    key = jax.random.PRNGKey(0)
    k_params, k_x = jax.random.split(key)

    params = init_params(k_params)

    # Small batch of CartPole observations, each of dim 4.
    x = jax.random.normal(k_x, (8, IN_DIM), dtype=jnp.float32)
    out = jax.block_until_ready(qnet_forward(x, params))
    ref = qnet_reference(x, params)
    np.testing.assert_allclose(np.asarray(out), np.asarray(ref),
                               rtol=1e-5, atol=1e-5)
    assert out.shape == (8, OUT_DIM) and out.dtype == jnp.float32

    # Replay-batch-sized call: grid == 1 (grid == 2 on v7x), minimal padding.
    xb = jax.random.normal(jax.random.PRNGKey(1), (1024 + 40, IN_DIM),
                           dtype=jnp.float32)
    outb = jax.block_until_ready(qnet_forward(xb, params))
    np.testing.assert_allclose(np.asarray(outb),
                               np.asarray(qnet_reference(xb, params)),
                               rtol=1e-5, atol=1e-5)
    assert outb.shape == (xb.shape[0], OUT_DIM)

    # Batch above MAX_TILE to exercise the multi-step (128-aligned tile) path.
    xc = jax.random.normal(jax.random.PRNGKey(2), (MAX_TILE + 904, IN_DIM),
                           dtype=jnp.float32)
    outc = jax.block_until_ready(qnet_forward(xc, params))
    np.testing.assert_allclose(np.asarray(outc),
                               np.asarray(qnet_reference(xc, params)),
                               rtol=1e-5, atol=1e-5)
    assert outc.shape == (xc.shape[0], OUT_DIM)

    print("KERNEL_OK")
</pallas_src>

<mosaic_0001>
module attributes {stable_mosaic.version = 11 : i64} {
  func.func @qnet_kernel(%arg0: i32, %arg1: memref<8x8xf32, #tpu.memory_space<vmem>>, %arg2: memref<64x8xf32, #tpu.memory_space<vmem>>, %arg3: memref<64x64xf32, #tpu.memory_space<vmem>>, %arg4: memref<64x1xf32, #tpu.memory_space<vmem>>, %arg5: memref<8x64xf32, #tpu.memory_space<vmem>>, %arg6: memref<8x1xf32, #tpu.memory_space<vmem>>, %arg7: memref<8x8xf32, #tpu.memory_space<vmem>>) attributes {dimension_semantics = [#tpu.dimension_semantics<parallel>], iteration_bounds = array<i64: 1>, scalar_prefetch = 0 : i64, scratch_operands = 0 : i64, tpu.core_type = #tpu.core_type<tc>, window_params = [{transform_indices = @transform_0, window_bounds = array<i64: 8, 8>}, {pipeline_mode = #tpu.pipeline_mode<synchronous>, transform_indices = @transform_1, window_bounds = array<i64: 64, 8>}, {pipeline_mode = #tpu.pipeline_mode<synchronous>, transform_indices = @transform_2, window_bounds = array<i64: 64, 64>}, {pipeline_mode = #tpu.pipeline_mode<synchronous>, transform_indices = @transform_3, window_bounds = array<i64: 64, 1>}, {pipeline_mode = #tpu.pipeline_mode<synchronous>, transform_indices = @transform_4, window_bounds = array<i64: 8, 64>}, {pipeline_mode = #tpu.pipeline_mode<synchronous>, transform_indices = @transform_5, window_bounds = array<i64: 8, 1>}, {transform_indices = @transform_6, window_bounds = array<i64: 8, 8>}]} {
    %c0 = arith.constant 0 : index
    %c0_0 = arith.constant 0 : index
    %0 = vector.load %arg1[%c0, %c0_0] : memref<8x8xf32, #tpu.memory_space<vmem>>, vector<8x8xf32>
    %c0_1 = arith.constant 0 : index
    %c0_2 = arith.constant 0 : index
    %1 = vector.load %arg2[%c0_1, %c0_2] : memref<64x8xf32, #tpu.memory_space<vmem>>, vector<64x8xf32>
    %cst = arith.constant dense<0.000000e+00> : vector<64x8xf32>
    %2 = tpu.matmul %1, %0, %cst {dimension_numbers = #tpu.dot_dimension_numbers<[1], [0], [0], [1], [0, 0, 1, 1], [], []>} : vector<64x8xf32>, vector<8x8xf32>, vector<64x8xf32> -> vector<64x8xf32>
    %cst_3 = arith.constant 0.000000e+00 : f32
    %3 = vector.broadcast %cst_3 : f32 to vector<64x8xf32>
    %4 = arith.maximumf %2, %3 : vector<64x8xf32>
    %c0_4 = arith.constant 0 : index
    %c0_5 = arith.constant 0 : index
    %5 = vector.load %arg3[%c0_4, %c0_5] : memref<64x64xf32, #tpu.memory_space<vmem>>, vector<64x64xf32>
    %cst_6 = arith.constant dense<0.000000e+00> : vector<64x8xf32>
    %6 = tpu.matmul %5, %4, %cst_6 {dimension_numbers = #tpu.dot_dimension_numbers<[1], [0], [0], [1], [0, 0, 1, 1], [], []>} : vector<64x64xf32>, vector<64x8xf32>, vector<64x8xf32> -> vector<64x8xf32>
    %c0_7 = arith.constant 0 : index
    %c0_8 = arith.constant 0 : index
    %7 = vector.load %arg4[%c0_7, %c0_8] : memref<64x1xf32, #tpu.memory_space<vmem>>, vector<64x1xf32>
    %8 = vector.broadcast %7 : vector<64x1xf32> to vector<64x8xf32>
    %9 = arith.addf %6, %8 : vector<64x8xf32>
    %cst_9 = arith.constant 0.000000e+00 : f32
    %10 = vector.broadcast %cst_9 : f32 to vector<64x8xf32>
    %11 = arith.maximumf %9, %10 : vector<64x8xf32>
    %c0_10 = arith.constant 0 : index
    %c0_11 = arith.constant 0 : index
    %12 = vector.load %arg5[%c0_10, %c0_11] : memref<8x64xf32, #tpu.memory_space<vmem>>, vector<8x64xf32>
    %cst_12 = arith.constant dense<0.000000e+00> : vector<8x8xf32>
    %13 = tpu.matmul %12, %11, %cst_12 {dimension_numbers = #tpu.dot_dimension_numbers<[1], [0], [0], [1], [0, 0, 1, 1], [], []>} : vector<8x64xf32>, vector<64x8xf32>, vector<8x8xf32> -> vector<8x8xf32>
    %c0_13 = arith.constant 0 : index
    %c0_14 = arith.constant 0 : index
    %14 = vector.load %arg6[%c0_13, %c0_14] : memref<8x1xf32, #tpu.memory_space<vmem>>, vector<8x1xf32>
    %15 = vector.broadcast %14 : vector<8x1xf32> to vector<8x8xf32>
    %16 = arith.addf %13, %15 : vector<8x8xf32>
    %c0_15 = arith.constant 0 : index
    %c0_16 = arith.constant 0 : index
    %17 = vector.load %arg7[%c0_15, %c0_16] : memref<8x8xf32, #tpu.memory_space<vmem>>, vector<8x8xf32>
    tpu.vector_store %arg7[%c0_15, %c0_16], %16 {strides = array<i32>} : memref<8x8xf32, #tpu.memory_space<vmem>>, vector<8x8xf32>,
    return
  }
  func.func @transform_0(%arg0: i32) -> (i32, i32) {
    %c0_i32 = arith.constant 0 : i32
    %c0_i32_0 = arith.constant 0 : i32
    return %c0_i32, %arg0 : i32, i32
  }
  func.func @transform_1(%arg0: i32) -> (i32, i32) {
    %c0_i32 = arith.constant 0 : i32
    %c0_i32_0 = arith.constant 0 : i32
    %c0_i32_1 = arith.constant 0 : i32
    return %c0_i32, %c0_i32_0 : i32, i32
  }
  func.func @transform_2(%arg0: i32) -> (i32, i32) {
    %c0_i32 = arith.constant 0 : i32
    %c0_i32_0 = arith.constant 0 : i32
    %c0_i32_1 = arith.constant 0 : i32
    return %c0_i32, %c0_i32_0 : i32, i32
  }
  func.func @transform_3(%arg0: i32) -> (i32, i32) {
    %c0_i32 = arith.constant 0 : i32
    %c0_i32_0 = arith.constant 0 : i32
    %c0_i32_1 = arith.constant 0 : i32
    return %c0_i32, %c0_i32_0 : i32, i32
  }
  func.func @transform_4(%arg0: i32) -> (i32, i32) {
    %c0_i32 = arith.constant 0 : i32
    %c0_i32_0 = arith.constant 0 : i32
    %c0_i32_1 = arith.constant 0 : i32
    return %c0_i32, %c0_i32_0 : i32, i32
  }
  func.func @transform_5(%arg0: i32) -> (i32, i32) {
    %c0_i32 = arith.constant 0 : i32
    %c0_i32_0 = arith.constant 0 : i32
    %c0_i32_1 = arith.constant 0 : i32
    return %c0_i32, %c0_i32_0 : i32, i32
  }
  func.func @transform_6(%arg0: i32) -> (i32, i32) {
    %c0_i32 = arith.constant 0 : i32
    %c0_i32_0 = arith.constant 0 : i32
    return %c0_i32, %arg0 : i32, i32
  }
}

</mosaic_0001>

<bundles_post_ra>
// kernel: qnet_forward.1
= control target key start
LH: loop header
LB: loop body
LE: loop exit
PB: predicated region body
PF: predicated region fallthrough
CT: control target
= control target key end

     0   :  { %vm32_vm0 = vcmask 64512   ;;  %vm226_vm1 = vcmask 523264   ;;  %v595_v10 = vmov 0   ;;  %v596_v47 = vmov 0.0|0.0   ;;  %s736_s0 = inlined_call_operand.vmem [shape: f32[8,8], index: 0, kind: input, shape index: {}]   ;;  %s737_s1 = inlined_call_operand.vmem [shape: f32[64,8], index: 1, kind: input, shape index: {}]   ;;  %s738_s2 = inlined_call_operand.vmem [shape: f32[64,64], index: 2, kind: input, shape index: {}]   ;;  %s739_s3 = inlined_call_operand.vmem [shape: f32[64,1], index: 3, kind: input, shape index: {}]   ;;  %s740_s5 = inlined_call_operand.vmem [shape: f32[8,1], index: 5, kind: input, shape index: {}]   ;;  %s741_s4 = inlined_call_operand.vmem [shape: f32[8,64], index: 4, kind: input, shape index: {}]   ;;  %s742_s6 = inlined_call_operand.vmem [shape: f32[8,8], index: 6, kind: output, shape index: {}]  }
   0x1   :  { %v23_v0 = vld [vmem:[%s736_s0] sm:$0xff]  ;;  %v25_v2 = vld [vmem:[%s737_s1 + $0x8] sm:$0xff]  ;;  %v26_v3 = vld [vmem:[%s737_s1 + $0x10] sm:$0xff]  ;;  %593 = vset.pattern.permute.xlu0 %v595_v10  ;;  %594 = vset.pattern.permute.xlu1 %v595_v10  ;;  %vm597_vm2 = vmmov 0   ;;  %v598_v48 = vmov 0.0  }
   0x2   :  { %v24_v1 = vld [vmem:[%s737_s1] sm:$0xff]  ;;  %500 = vmatprep.subr.mxu0 %v23_v0  ;;  %v27_v4 = vld [vmem:[%s737_s1 + $0x18] sm:$0xff]  ;;  %v29_v6 = vld [vmem:[%s737_s1 + $0x28] sm:$0xff] }
   0x3   :  { %502 = vmatprep.mubr.msk.f32.mxu0 %vm32_vm0, %v24_v1  ;;  %501 = vmatpush3.msra.mxu0 %v23_v0  ;;  %v28_v5 = vld [vmem:[%s737_s1 + $0x20] sm:$0xff]  ;;  %v30_v7 = vld [vmem:[%s737_s1 + $0x30] sm:$0xff]  ;;  %v31_v8 = vld [vmem:[%s737_s1 + $0x38] sm:$0xff] }
   0x4   :  { %503 = vmatmul.mubr.msk.f32.vlgmr.msra.gmra.mrb[0].mxu0 %vm32_vm0, %v25_v2  ;;  %v170_v9 = vld [vmem:[%s738_s2] sm:$0xff]  ;;  %v180_v12 = vld [vmem:[%s739_s3 + $0x10] sm:$0xff]  ;;  %v179_v13 = vld [vmem:[%s739_s3 + $0x8] sm:$0xff]  ;;  %577 = vmatprep.subr.bf16.mxu0 %v596_v47 }
   0x5   :  { %505 = vmatprep.mubr.msk.f32.mxu0 %vm32_vm0, %v26_v3  ;;  %530 = vmatprep.mubr.msk.f32.mxu1 %vm226_vm1, %v170_v9  ;;  %v178_v11 = vld [vmem:[%s739_s3] sm:$0xff]  ;;  %v181_v14 = vld [vmem:[%s739_s3 + $0x18] sm:$0xff]  ;;  %v183_v16 = vld [vmem:[%s739_s3 + $0x28] sm:$0xff] }
   0x6   :  { %188 = vperm.xlu0 %593, %v178_v11   ;;  %198 = vperm.xlu1 %594, %v180_v12   ;;  %v182_v15 = vld [vmem:[%s739_s3 + $0x20] sm:$0xff]  ;;  %v184_v17 = vld [vmem:[%s739_s3 + $0x30] sm:$0xff]  ;;  %v185_v18 = vld [vmem:[%s739_s3 + $0x38] sm:$0xff] }
   0x7   :  { %v365_v19 = vld [vmem:[%s740_s5] sm:$0xff]  ;;  %v171_v40 = vld [vmem:[%s738_s2 + $0x8] sm:$0xff]  ;;  %v172_v41 = vld [vmem:[%s738_s2 + $0x10] sm:$0xff] }
   0x8   :  { %506 = vmatmul.mubr.msk.f32.gmra.mrb[2].mxu0 %vm32_vm0, %v27_v4  ;;  %v173_v42 = vld [vmem:[%s738_s2 + $0x18] sm:$0xff]  ;;  %v174_v43 = vld [vmem:[%s738_s2 + $0x20] sm:$0xff]  ;;  %v175_v44 = vld [vmem:[%s738_s2 + $0x28] sm:$0xff] }
   0x9   :  { %508 = vmatprep.mubr.msk.f32.mxu0 %vm32_vm0, %v28_v5  ;;  %v176_v45 = vld [vmem:[%s738_s2 + $0x30] sm:$0xff]  ;;  %v177_v46 = vld [vmem:[%s738_s2 + $0x38] sm:$0xff] }
   0xa   :  { %193 = vperm.xlu0 %593, %v179_v13   ;;  %203 = vperm.xlu1 %594, %v181_v14  }
   0xc   :  { %509 = vmatmul.mubr.msk.f32.gmra.mrb[4].mxu0 %vm32_vm0, %v29_v6 }
   0xd   :  { %511 = vmatprep.mubr.msk.f32.mxu0 %vm32_vm0, %v30_v7 }
   0xe   :  { %208 = vperm.xlu0 %593, %v182_v15   ;;  %213 = vperm.xlu1 %594, %v183_v16  }
  0x10   :  { %512 = vmatmul.mubr.msk.f32.gmra.mrb[6].mxu0 %vm32_vm0, %v31_v8 }
  0x11   :  { %558 = vmatprep.mubr.msk.f32.mxu0 %vm597_vm2, %v598_v48 }
  0x12   :  { %218 = vperm.xlu0 %593, %v184_v17   ;;  %223 = vperm.xlu1 %594, %v185_v18  }
  0x16   :  { %368 = vperm.xlu0 %593, %v365_v19  }
  0x85   :  { %v189_v49 = vpop.permute.xlu0 %188  ;;  %v199_v50 = vpop.permute.xlu1 %198 }
  0x89   :  { %v194_v51 = vpop.permute.xlu0 %193  ;;  %v204_v52 = vpop.permute.xlu1 %203 }
  0x8d   :  { %v214_v62 = vpop.permute.xlu1 %213  ;;  %v209_v1 = vpop.permute.xlu0 %208 }
  0x91   :  { %v224_v10 = vpop.permute.xlu1 %223  ;;  %v219_v13 = vpop.permute.xlu0 %218 }
  0xd7   :  { %v504_v20 = vpop.f32.mrb[0].mxu0 }
  0xd8   :  { %v163_v21 = vmax.f32 %v504_v20, 0.0  ;;  %v123_v22 = vpop.f32.mrb[1].mxu0 }
  0xd9   :  { %v162_v23 = vmax.f32 %v123_v22, 0.0  ;;  %v369_v22 = vpop.permute.xlu0 %368 }
  0xdb   :  { %v507_v24 = vpop.f32.mrb[2].mxu0  ;;  %v561_v25 = vpack.c.bf16 %v163_v21, %v162_v23  ;;  %v364_v21 = vld [vmem:[%s741_s4] sm:$0xff] }
  0xdc   :  { %v165_v26 = vmax.f32 %v507_v24, 0.0  ;;  %v133_v27 = vpop.f32.mrb[3].mxu0 }
  0xdd   :  { %v164_v28 = vmax.f32 %v133_v27, 0.0  ;;  %562 = vmatprep.subr.bf16.mxu1 %v561_v25 }
  0xde   :  { %564 = vmatpush3.bf16.msra.mxu1 %v561_v25 }
  0xdf   :  { %v565_v29 = vpack.c.bf16 %v165_v26, %v164_v28  ;;  %v510_v30 = vpop.f32.mrb[4].mxu0 }
  0xe0   :  { %v167_v31 = vmax.f32 %v510_v30, 0.0  ;;  %v143_v32 = vpop.f32.mrb[5].mxu0 }
  0xe1   :  { %v166_v33 = vmax.f32 %v143_v32, 0.0  ;;  %566 = vmatprep.subr.bf16.mxu1 %v565_v29 }
  0xe2   :  { %568 = vmatpush3.bf16.msra.mxu1 %v565_v29 }
  0xe3   :  { %v569_v34 = vpack.c.bf16 %v167_v31, %v166_v33  ;;  %v513_v35 = vpop.f32.mrb[6].mxu0 }
  0xe4   :  { %v169_v36 = vmax.f32 %v513_v35, 0.0  ;;  %v153_v37 = vpop.f32.mrb[7].mxu0 }
  0xe5   :  { %v168_v38 = vmax.f32 %v153_v37, 0.0  ;;  %570 = vmatprep.subr.bf16.mxu1 %v569_v34 }
  0xe6   :  { %572 = vmatpush3.bf16.msra.mxu1 %v569_v34 }
  0xe7   :  { %v573_v39 = vpack.c.bf16 %v169_v36, %v168_v38 }
  0xe9   :  { %574 = vmatprep.subr.bf16.mxu1 %v573_v39 }
  0xea   :  { %576 = vmatpush3.bf16.msra.mxu1 %v573_v39 }
  0xed   :  { %531 = vmatmul.mubr.msk.f32.vlgmr.msra.gmra.mrb[0].mxu1 %vm226_vm1, %v171_v40 }
  0xee   :  { %533 = vmatprep.mubr.msk.f32.mxu1 %vm226_vm1, %v172_v41 }
  0xf1   :  { %534 = vmatmul.mubr.msk.f32.gmra.mrb[2].mxu1 %vm226_vm1, %v173_v42 }
  0xf2   :  { %536 = vmatprep.mubr.msk.f32.mxu1 %vm226_vm1, %v174_v43 }
  0xf5   :  { %537 = vmatmul.mubr.msk.f32.gmra.mrb[4].mxu1 %vm226_vm1, %v175_v44 }
  0xf6   :  { %539 = vmatprep.mubr.msk.f32.mxu1 %vm226_vm1, %v176_v45 }
  0xf9   :  { %540 = vmatmul.mubr.msk.f32.gmra.mrb[6].mxu1 %vm226_vm1, %v177_v46 }
 0x1c0   :  { %v532_v53 = vpop.f32.mrb[0].mxu1 }
 0x1c1   :  { %v323_v54 = vadd.f32 %v532_v53, %v194_v51  ;;  %v317_v55 = vpop.f32.mrb[1].mxu1 }
 0x1c2   :  { %v318_v56 = vadd.f32 %v317_v55, %v189_v49 }
 0x1c3   :  { %v357_v57 = vmax.f32 %v323_v54, 0.0 }
 0x1c4   :  { %v356_v58 = vmax.f32 %v318_v56, 0.0  ;;  %v535_v59 = vpop.f32.mrb[2].mxu1 }
 0x1c5   :  { %v333_v60 = vadd.f32 %v535_v59, %v204_v52  ;;  %v327_v61 = vpop.f32.mrb[3].mxu1 }
 0x1c6   :  { %v578_v63 = vpack.c.bf16 %v357_v57, %v356_v58  ;;  %v328_v0 = vadd.f32 %v327_v61, %v199_v50 }
 0x1c7   :  { %v359_v2 = vmax.f32 %v333_v60, 0.0 }
 0x1c8   :  { %v358_v3 = vmax.f32 %v328_v0, 0.0  ;;  %v538_v4 = vpop.f32.mrb[4].mxu1  ;;  %579 = vmatpush3.bf16.msra.mxu0 %v578_v63 }
 0x1c9   :  { %v343_v5 = vadd.f32 %v538_v4, %v214_v62  ;;  %v337_v6 = vpop.f32.mrb[5].mxu1  ;;  %580 = vmatprep.subr.bf16.mxu0 %v596_v47 }
 0x1ca   :  { %v581_v7 = vpack.c.bf16 %v359_v2, %v358_v3  ;;  %v338_v8 = vadd.f32 %v337_v6, %v209_v1 }
 0x1cb   :  { %v361_v9 = vmax.f32 %v343_v5, 0.0 }
 0x1cc   :  { %v360_v11 = vmax.f32 %v338_v8, 0.0  ;;  %v541_v12 = vpop.f32.mrb[6].mxu1  ;;  %582 = vmatpush3.bf16.msra.mxu0 %v581_v7 }
 0x1cd   :  { %v353_v14 = vadd.f32 %v541_v12, %v224_v10  ;;  %v347_v15 = vpop.f32.mrb[7].mxu1  ;;  %583 = vmatprep.subr.bf16.mxu0 %v596_v47 }
 0x1ce   :  { %v584_v16 = vpack.c.bf16 %v361_v9, %v360_v11  ;;  %v348_v17 = vadd.f32 %v347_v15, %v219_v13 }
 0x1cf   :  { %v363_v18 = vmax.f32 %v353_v14, 0.0 }
 0x1d0   :  { %v362_v19 = vmax.f32 %v348_v17, 0.0  ;;  %585 = vmatpush3.bf16.msra.mxu0 %v584_v16 }
 0x1d1   :  { %586 = vmatprep.subr.bf16.mxu0 %v596_v47 }
 0x1d2   :  { %v587_v20 = vpack.c.bf16 %v363_v18, %v362_v19 }
 0x1d4   :  { %588 = vmatpush3.bf16.msra.mxu0 %v587_v20 }
 0x1d7   :  { %559 = vmatmul.mubr.msk.f32.vlgmr.msra.gmra.mrb[8].mxu0 %vm226_vm1, %v364_v21 }
 0x2aa   :  { %v440_v23 = vpop.f32.mrb[8].mxu0 }
 0x2ab   :  { %v441_v24 = vadd.f32 %v440_v23, %v369_v22  ;;  %v560_v25 = vpop.f32.mrb[9].mxu0 }
 0x2ad   :  { %444 = vst.msk [vmem:[%s742_s6] sm:$0xff] %vm32_vm0, %v441_v24 }

</bundles_post_ra>
